<compile_context>
chip_gen: v5e
topology: v5e:2x2
jax: 0.10.0
libtpu: 0.0.40
codegen_flags: <defaults>
</compile_context>

<pallas_src>
import jax
import jax.numpy as jnp
import numpy as np
from jax.experimental import pallas as pl
from jax.experimental.pallas import tpu as pltpu

OUT_SCALE = 0.001   # SiamFC head out_scale
LANE_TILE = 256     # backbone lane tile (multiple of 128); >=2 tiles keeps 2 TCs busy
HEAD_LANE = 128     # head output lane padding


# ----------------------------------------------------------------------------
# Glue: im2col + batch folding + lane padding (data movement only, plain JAX)
# ----------------------------------------------------------------------------
def _im2col(x, kh, kw):
    """x: [B, C, H, W] -> cols: [B, C*kh*kw, Ho*Wo]; contraction order (c,i,j)
    matches PyTorch weight.reshape(C_out, -1)."""
    B, C, H, W = x.shape
    Ho, Wo = H - kh + 1, W - kw + 1
    cols = []
    for i in range(kh):
        for j in range(kw):
            cols.append(x[:, :, i:i + Ho, j:j + Wo].reshape(B, C, Ho * Wo))
    cols = jnp.stack(cols, axis=2)              # [B, C, kh*kw, Ho*Wo]
    return cols.reshape(B, C * kh * kw, Ho * Wo), (Ho, Wo)


def _fold_batch_to_lanes(cols):
    """[B, K, N] -> [K, B*N] (batch folded into the lane axis)."""
    B, K, N = cols.shape
    return jnp.transpose(cols, (1, 0, 2)).reshape(K, B * N)


def _pad_lanes(a, mult):
    n = a.shape[-1]
    npad = -(-n // mult) * mult
    if npad != n:
        a = jnp.pad(a, [(0, 0)] * (a.ndim - 1) + [(0, npad - n)])
    return a


# ----------------------------------------------------------------------------
# Backbone: Conv2d(valid, stride 1) + bias + ReLU for z AND x in one call
# ----------------------------------------------------------------------------
def _conv_relu_kernel(w_ref, b_ref, cols_ref, o_ref):
    # w_ref: [C_out, K] bf16 (resident)   b_ref: [C_out, 1] f32 (resident)
    # cols_ref: [K, LANE_TILE] bf16       o_ref: [C_out, LANE_TILE] bf16
    acc = jnp.dot(w_ref[...], cols_ref[...], preferred_element_type=jnp.float32)
    o_ref[...] = jnp.maximum(acc + b_ref[...], 0.0).astype(o_ref.dtype)


def backbone_fused(w, b, z, x):
    """w: [C_out, C_in, KH, KW], b: [C_out], z/x: [B, C_in, H, W].
    Returns (zf, xf) feature maps, bf16, NCHW."""
    B = z.shape[0]
    C_out, C_in, KH, KW = w.shape
    K = C_in * KH * KW

    cols_z, (Hzo, Wzo) = _im2col(z, KH, KW)
    cols_x, (Hxo, Wxo) = _im2col(x, KH, KW)
    Nz, Nx = Hzo * Wzo, Hxo * Wxo

    # Fold batch into lanes and fuse z/x into one lane-dense slab.
    cols = jnp.concatenate(
        [_fold_batch_to_lanes(cols_z), _fold_batch_to_lanes(cols_x)], axis=1)
    cols = _pad_lanes(cols, LANE_TILE).astype(jnp.bfloat16)      # [K, Npad]
    Npad = cols.shape[1]
    nsteps = Npad // LANE_TILE

    wmat = w.reshape(C_out, K).astype(jnp.bfloat16)
    bcol = b.reshape(C_out, 1).astype(jnp.float32)

    out = pl.pallas_call(
        _conv_relu_kernel,
        out_shape=jax.ShapeDtypeStruct((C_out, Npad), jnp.bfloat16),
        grid_spec=pltpu.PrefetchScalarGridSpec(
            num_scalar_prefetch=0,
            grid=(nsteps,),
            in_specs=[
                pl.BlockSpec((C_out, K), lambda n: (0, 0)),        # resident
                pl.BlockSpec((C_out, 1), lambda n: (0, 0)),        # resident
                pl.BlockSpec((K, LANE_TILE), lambda n: (0, n)),
            ],
            out_specs=pl.BlockSpec((C_out, LANE_TILE), lambda n: (0, n)),
        ),
        compiler_params=pltpu.CompilerParams(dimension_semantics=("parallel",)),
    )(wmat, bcol, cols)

    def unfold(flat, Ho, Wo):
        # [C_out, B*N] -> [B, C_out, Ho, Wo]
        N = Ho * Wo
        return jnp.transpose(flat.reshape(C_out, B, N), (1, 0, 2)).reshape(
            B, C_out, Ho, Wo)

    zf = unfold(out[:, :B * Nz], Hzo, Wzo)
    xf = unfold(out[:, B * Nz:B * Nz + B * Nx], Hxo, Wxo)
    return zf, xf


# ----------------------------------------------------------------------------
# Head: per-batch cross-correlation (F.conv2d(x, z, groups=B)) * out_scale
# VPU multiply + sublane(K) reduction instead of a 1-row MXU matmul.
# ----------------------------------------------------------------------------
def _xcorr_kernel(z_ref, cols_ref, o_ref):
    # z_ref: [1, K, 1] bf16   cols_ref: [1, K, LN] bf16   o_ref: [1, 1, LN] f32
    z = z_ref[0].astype(jnp.float32)              # [K, 1]  (lane-broadcasts)
    c = cols_ref[0].astype(jnp.float32)           # [K, LN]
    r = jnp.sum(z * c, axis=0, keepdims=True)     # [1, LN]  VPU mul + K reduce
    o_ref[0] = (OUT_SCALE * r).astype(o_ref.dtype)


def siamfc_head(z_feat, x_feat):
    """z_feat: [B, C, Hz, Wz], x_feat: [B, C, Hx, Wx] -> [B, 1, Ho, Wo] f32."""
    B, C, Hz, Wz = z_feat.shape
    cols, (Ho, Wo) = _im2col(x_feat, Hz, Wz)              # [B, K, N]
    K, N = C * Hz * Wz, Ho * Wo
    cols = _pad_lanes(cols, HEAD_LANE).astype(jnp.bfloat16)   # [B, K, Npad]
    Npad = cols.shape[-1]
    zmat = z_feat.reshape(B, K, 1).astype(jnp.bfloat16)

    out = pl.pallas_call(
        _xcorr_kernel,
        out_shape=jax.ShapeDtypeStruct((B, 1, Npad), jnp.float32),
        grid_spec=pltpu.PrefetchScalarGridSpec(
            num_scalar_prefetch=0,
            grid=(B,),
            in_specs=[
                pl.BlockSpec((1, K, 1), lambda bb: (bb, 0, 0)),
                pl.BlockSpec((1, K, Npad), lambda bb: (bb, 0, 0)),
            ],
            out_specs=pl.BlockSpec((1, 1, Npad), lambda bb: (bb, 0, 0)),
        ),
        compiler_params=pltpu.CompilerParams(dimension_semantics=("parallel",)),
    )(zmat, cols)
    return out[:, :, :N].reshape(B, 1, Ho, Wo)


# ----------------------------------------------------------------------------
# Net.forward(z, x): backbone(z), backbone(x), head(z, x)
# ----------------------------------------------------------------------------
def net_forward(params, z, x):
    zf, xf = backbone_fused(params["w"], params["b"], z, x)
    return siamfc_head(zf, xf)


# Pure-JAX f32 reference (same math) for a sanity check.
def _ref_forward(params, z, x):
    dn = ("NCHW", "OIHW", "NCHW")

    def backbone(t):
        f = jax.lax.conv_general_dilated(t, params["w"], (1, 1), "VALID",
                                         dimension_numbers=dn)
        return jax.nn.relu(f + params["b"][None, :, None, None])

    zf, xf = backbone(z), backbone(x)
    B = zf.shape[0]
    xg = xf.reshape(1, B * xf.shape[1], xf.shape[2], xf.shape[3])
    out = jax.lax.conv_general_dilated(xg, zf, (1, 1), "VALID",
                                       dimension_numbers=dn,
                                       feature_group_count=B)
    return OUT_SCALE * out.reshape(B, 1, out.shape[2], out.shape[3])


if __name__ == "__main__":
    key = jax.random.PRNGKey(0)
    kz, kx, kw, kb = jax.random.split(key, 4)

    B, C_in, C_out, KH, KW = 2, 3, 16, 3, 3
    z = jax.random.normal(kz, (B, C_in, 8, 8), dtype=jnp.float32)     # exemplar
    x = jax.random.normal(kx, (B, C_in, 16, 16), dtype=jnp.float32)   # search

    params = {
        "w": 0.1 * jax.random.normal(kw, (C_out, C_in, KH, KW), dtype=jnp.float32),
        "b": 0.01 * jax.random.normal(kb, (C_out,), dtype=jnp.float32),
    }

    resp = net_forward(params, z, x)
    jax.block_until_ready(resp)

    ref = _ref_forward(params, z, x)
    assert resp.shape == ref.shape, (resp.shape, ref.shape)
    # bf16 operands (f32 accumulation) -> slightly looser tolerance than pure f32.
    np.testing.assert_allclose(np.asarray(resp), np.asarray(ref),
                               rtol=3e-2, atol=3e-3)
    print("KERNEL_OK")
</pallas_src>

<mosaic_0001>
module attributes {stable_mosaic.version = 11 : i64} {
  func.func @_conv_relu_kernel(%arg0: i32, %arg1: memref<16x27xbf16, #tpu.memory_space<vmem>>, %arg2: memref<16x1xf32, #tpu.memory_space<vmem>>, %arg3: memref<27x256xbf16, #tpu.memory_space<vmem>>, %arg4: memref<16x256xbf16, #tpu.memory_space<vmem>>) attributes {dimension_semantics = [#tpu.dimension_semantics<parallel>], iteration_bounds = array<i64: 2>, scalar_prefetch = 0 : i64, scratch_operands = 0 : i64, tpu.core_type = #tpu.core_type<tc>, window_params = [{pipeline_mode = #tpu.pipeline_mode<synchronous>, transform_indices = @transform_0, window_bounds = array<i64: 16, 27>}, {pipeline_mode = #tpu.pipeline_mode<synchronous>, transform_indices = @transform_1, window_bounds = array<i64: 16, 1>}, {transform_indices = @transform_2, window_bounds = array<i64: 27, 256>}, {transform_indices = @transform_3, window_bounds = array<i64: 16, 256>}]} {
    %c0 = arith.constant 0 : index
    %c0_0 = arith.constant 0 : index
    %0 = vector.load %arg1[%c0, %c0_0] : memref<16x27xbf16, #tpu.memory_space<vmem>>, vector<16x27xbf16>
    %c0_1 = arith.constant 0 : index
    %c0_2 = arith.constant 0 : index
    %1 = vector.load %arg3[%c0_1, %c0_2] : memref<27x256xbf16, #tpu.memory_space<vmem>>, vector<27x256xbf16>
    %cst = arith.constant dense<0.000000e+00> : vector<16x256xf32>
    %2 = tpu.matmul %0, %1, %cst {dimension_numbers = #tpu.dot_dimension_numbers<[1], [0], [0], [1], [0, 0, 1, 1], [], []>} : vector<16x27xbf16>, vector<27x256xbf16>, vector<16x256xf32> -> vector<16x256xf32>
    %c0_3 = arith.constant 0 : index
    %c0_4 = arith.constant 0 : index
    %3 = vector.load %arg2[%c0_3, %c0_4] : memref<16x1xf32, #tpu.memory_space<vmem>>, vector<16x1xf32>
    %4 = vector.broadcast %3 : vector<16x1xf32> to vector<16x256xf32>
    %5 = arith.addf %2, %4 : vector<16x256xf32>
    %cst_5 = arith.constant 0.000000e+00 : f32
    %6 = vector.broadcast %cst_5 : f32 to vector<16x256xf32>
    %7 = arith.maximumf %5, %6 : vector<16x256xf32>
    %8 = arith.truncf %7 : vector<16x256xf32> to vector<16x256xbf16>
    %c0_6 = arith.constant 0 : index
    %c0_7 = arith.constant 0 : index
    %9 = vector.load %arg4[%c0_6, %c0_7] : memref<16x256xbf16, #tpu.memory_space<vmem>>, vector<16x256xbf16>
    tpu.vector_store %arg4[%c0_6, %c0_7], %8 {strides = array<i32>} : memref<16x256xbf16, #tpu.memory_space<vmem>>, vector<16x256xbf16>,
    return
  }
  func.func @transform_0(%arg0: i32) -> (i32, i32) {
    %c0_i32 = arith.constant 0 : i32
    %c0_i32_0 = arith.constant 0 : i32
    %c0_i32_1 = arith.constant 0 : i32
    return %c0_i32, %c0_i32_0 : i32, i32
  }
  func.func @transform_1(%arg0: i32) -> (i32, i32) {
    %c0_i32 = arith.constant 0 : i32
    %c0_i32_0 = arith.constant 0 : i32
    %c0_i32_1 = arith.constant 0 : i32
    return %c0_i32, %c0_i32_0 : i32, i32
  }
  func.func @transform_2(%arg0: i32) -> (i32, i32) {
    %c0_i32 = arith.constant 0 : i32
    %c0_i32_0 = arith.constant 0 : i32
    return %c0_i32, %arg0 : i32, i32
  }
  func.func @transform_3(%arg0: i32) -> (i32, i32) {
    %c0_i32 = arith.constant 0 : i32
    %c0_i32_0 = arith.constant 0 : i32
    return %c0_i32, %arg0 : i32, i32
  }
}

</mosaic_0001>

<bundles_post_ra>
// kernel: tpu_custom_call.1
= control target key start
LH: loop header
LB: loop body
LE: loop exit
PB: predicated region body
PF: predicated region fallthrough
CT: control target
= control target key end

     0   :  { %8 = vsyncpa [#allocation3], 0  ;;  %s733_s0 = inlined_call_operand.vmem [shape: bf16[16,27], index: 0, kind: input, shape index: {}]   ;;  %s734_s1 = inlined_call_operand.vmem [shape: f32[16,1], index: 1, kind: input, shape index: {}]   ;;  %s735_s2 = inlined_call_operand.hbm [shape: bf16[27,512], index: 2, kind: input, shape index: {}]   ;;  %s736_s3 = inlined_call_operand.hbm [shape: bf16[16,512], index: 3, kind: output, shape index: {}]  }
   0x1   :  { %10 = vsyncpa [#allocation3 + $0x1], 0 }
   0x2   :  { %11 = vsyncpa [#allocation4], 0 }
   0x3   :  { %13 = vsyncpa [#allocation4 + $0x1], 0  ;;  %s598_s12 = smov 0   ;;  %s600_s13 = smov 0  }
   0x4   :  { %s602_s14 = smov 0   ;;  %s604_s15 = smov 0  }
   0x5 LB: > { %s619_s16 = sadd.s32 4294967295, %s568_s15   ;;  %s374_s17 = sadd.s32 4294967294, %s568_s15   ;;  %s568_s15 = sphi %s604_s15, %s745_s15   ;;  %s564_s14 = sphi %s602_s14, %s744_s14   ;;  %s560_s13 = sphi %s600_s13, %s743_s13   ;;  %s556_s12 = sphi %s598_s12, %s742_s12  }
   0x6   : > { %s623_s18 = sadd.s32 1, %s568_s15   ;;  %s68_s19 = sadd.s32 1, %s564_s14 }
   0x7   : > { %s65_s20 = ssub.s32 %s568_s15, %s623_s18  ;;  %p75_p0 = scmp.ne.s32.totalorder %s564_s14, %s560_s13 }
   0x8   : > { %p66_p1 = scmp.eq.s32.totalorder %s65_s20, 0  ;;  %p76_p2 = scmp.eq.s32.totalorder %s568_s15, 0 }
   0x9   : > { %p81_p3 = scmp.ne.s32.totalorder %s560_s13, %s556_s12  ;;  %p82_p4 = scmp.eq.s32.totalorder %s619_s16, 0 }
   0xa   : > { %s635_s21 = scalar_select %p66_p1, %s564_s14, %s68_s19  }
   0xb   : > { %p637_p5 = por %p76_p2, %p75_p0  ;;  %p641_p6 = por %p82_p4, %p81_p3 }
   0xc   : > { %p105_p7 = scmp.eq.s32.totalorder %s619_s16, 1  ;;  %p111_p8 = scmp.eq.s32.totalorder %s374_s17, 1 }
   0xd   : > { %p376_p9 = scmp.ge.s32.totalorder %s568_s15, 2  ;;  %p429_p10 = scmp.lt.s32.totalorder %s568_s15, 2 }
   0xe   : > { %p648_p11 = por %p105_p7, %p75_p0  ;;  %p652_p12 = por %p111_p8, %p81_p3 }
   0xf   : > { %s137_s26 = sand.u32 1, %s564_s14   ;;  %s410_s27 = sshll.u32 %s568_s15, 3 }
  0x10   : > { %s377_s28 = sshll.u32 %s137_s26, 5  ;;  %s146_s4 = scalar_lea.hbm %s735_s2, %s410_s27 }
  0x11   : > { %s147_s5 = sshll.u32 %s146_s4, 4  ;;  %s141_s6 = scalar_lea.vmem [#allocation2], %s377_s28  ;;  %s148_s5 = int_to_ptr.hbm [resolvable:$true] %s147_s5 }
  0x12   : > { %s149_s7 = sshll.u32 %s141_s6, 4  ;;  %p663_p13 = pnand %p429_p10, %p637_p5  ;;  %s150_s7 = int_to_ptr.vmem [resolvable:$true] %s149_s7 }
  0x13   : > { %p380_p0 = scmp.ge.s32.totalorder %s568_s15, 1  ;;  %s138_s9 = scalar_lea.sflag [#allocation3], %s137_s26 }
  0x14   : > { %s472_s10 = sshra.s32 %s148_s5, 4  ;;  %p476_p2 = pneg %p663_p13  ;;  %s473_s10 = int_to_ptr.hbm [resolvable:$true] %s472_s10 }
  0x15   : > { %s474_s11 = scalar_lea.hbm %s473_s10, 32  ;;  %s479_s20 = scalar_lea.hbm %s735_s2, 64 }
  0x16   : > { %p475_p1 = scmp.ne.s32.totalorder %s473_s10, %s474_s11  ;;  %p480_p5 = scmp.lt.s32.totalorder %s473_s10, %s735_s2 }
  0x17   : > { %p481_p7 = scmp.lt.s32.totalorder %s479_s20, %s474_s11 }
  0x18   : > { %p477_p3 = pnand %p476_p2, %p475_p1 }
  0x19   : > { %p482_p8 = por %p481_p7, %p480_p5 }
  0x1a   : > { %p478_p4 = pneg %p477_p3 }
  0x1c   : > { %p483_p10 = pnand %p482_p8, %p478_p4 }
  0x1e   : > { %486 = shalt.err (!%p483_p10)
}
  0x1f   : > { %s570_s26 = smov 256   ;;  %s571_s28 = smov 128  }
  0x20   : > { %s572_s29 = smov 8   ;;  %p157_p1 = scmp.lt.s32.totalorder %s568_s15, 3 }
  0x21   : > { %424 = dma.hbm_to_vmem [thread:$0]  (!%p663_p13), %s148_s5, 512, %s150_s7, %s138_s9, %s570_s26, %s571_s28, %s572_s29  }
  0x22   : > { %p158_p2 = pnand %p380_p0, %p157_p1 }
  0x23   : > { %s682_s30 = sand.u32 (!%p158_p2), 1, %s560_s13  }
  0x24   : > { %161 = sbr.rel (%p158_p2) target bundleno = 201 (0xc9), region = 32  ;;  %s381_s4 = sshll.u32 (!%p158_p2), %s682_s30, 5 }
  0x25   : > { %s164_s6 = scalar_lea.sflag (!%p158_p2), [#allocation3], %s682_s30  ;;  %s167_s10 = scalar_lea.vmem (!%p158_p2), [#allocation2], %s381_s4 }
  0x29   : > { %547 = dma.done.wait (%p641_p6), %s164_s6, 512  }
  0x2a   : > { %549 = vsyncadd (%p641_p6), %s164_s6, 4294966784  ;;  %vm239_vm0 = vcmask 1044480   ;;  %v573_v0 = vmov 0   ;;  %vm240_vm1 = vcmask 1045504   ;;  %v574_v1 = vmov 65535   ;;  %v200_v15 = vld [vmem:[%s734_s1] sm:$0xff] }
  0x2b   : > { %471 = vset.pattern.permute.xlu0 %v573_v0  ;;  %v241_v2 = vsel %vm239_vm0, 4294967295, %v574_v1  ;;  %v397_v4 = vld [vmem:[%s167_s10 + $0x10] sm:$0xf]  ;;  %v415_v5 = vld [vmem:[%s167_s10 + $0x14] sm:$0x30]  ;;  %v411_v19 = vld [vmem:[%s733_s0] sm:$0xff] }
  0x2c   : > { %v242_v3 = vsel %vm240_vm1, %v241_v2, 0  ;;  %v414_v6 = vld [vmem:[%s167_s10 + $0x14] sm:$0xf]  ;;  %v398_v7 = vor.u32 %v415_v5, %v397_v4  ;;  %v399_v8 = vld [vmem:[%s167_s10 + $0x18] sm:$0x30]  ;;  %204 = vperm.xlu0 %471, %v200_v15   ;;  %vm235_vm2 = vcmask 220160  }
  0x2d   : > { %v402_v9 = vor.u32 %v414_v6, %v399_v8  ;;  %v389_v10 = vld [vmem:[%s167_s10] sm:$0xf]  ;;  %v413_v11 = vld [vmem:[%s167_s10 + $0x4] sm:$0xf0]  ;;  %v412_v13 = vld [vmem:[%s167_s10 + $0x4] sm:$0xf] }
  0x2e   : > { %v244_v12 = vand.u32 %v398_v7, %v242_v3  ;;  %v391_v14 = vld [vmem:[%s167_s10 + $0x8] sm:$0xf0]  ;;  %v390_v17 = vor.u32 %v413_v11, %v389_v10  ;;  %s382_s17 = sshll.u32 %s682_s30, 4  ;;  %s416_s19 = sshll.u32 %s619_s16, 3 }
  0x2f   : > { %v247_v16 = vand.u32 %v402_v9, %v242_v3  ;;  %v394_v18 = vor.u32 %v412_v13, %v391_v14  ;;  %v201_v20 = vld [vmem:[%s734_s1 + $0x8] sm:$0xff]  ;;  %s297_s27 = scalar_lea.hbm %s736_s3, %s416_s19  ;;  %s190_s26 = scalar_lea.vmem [#allocation5], %s382_s17 }
  0x30   : > { %255 = vmatpush.bf16.msra.mxu0 %v244_v12  ;;  %s298_s28 = sshll.u32 %s190_s26, 4  ;;  %s300_s29 = sshll.u32 %s297_s27, 4  ;;  %s299_s28 = int_to_ptr.vmem [resolvable:$true] %s298_s28  ;;  %s301_s29 = int_to_ptr.hbm [resolvable:$true] %s300_s29 }
  0x31   : > { %269 = vmatpush.bf16.msra.mxu1 %v247_v16  ;;  %s286_s16 = scalar_lea.sflag [#allocation4], %s682_s30  ;;  %s516_s4 = sshra.s32 %s301_s29, 4  ;;  %s517_s4 = int_to_ptr.hbm [resolvable:$true] %s516_s4 }
  0x32   : > { %s518_s6 = scalar_lea.hbm %s517_s4, 16  ;;  %s522_s5 = scalar_lea.hbm %s736_s3, 32 }
  0x33   : > { %p519_p6 = scmp.ne.s32.totalorder %s517_s4, %s518_s6  ;;  %p523_p3 = scmp.lt.s32.totalorder %s517_s4, %s736_s3 }
  0x34   : > { %256 = vmatpush.bf16.msra.mxu0 %v390_v17  ;;  %209 = vperm.xlu0 %471, %v201_v20   ;;  %p524_p4 = scmp.lt.s32.totalorder %s522_s5, %s518_s6 }
  0x35   : > { %270 = vmatpush.bf16.msra.mxu1 %v394_v18  ;;  %p520_p13 = pnand %p519_p6, %p648_p11 }
  0x36   : > { %p525_p5 = por %p524_p4, %p523_p3 }
  0x37   : > { %403 = vmatmul.msk.bf16.vlgmr.msra.gmra.mxu0 %vm235_vm2, %v411_v19  ;;  %p521_p0 = pneg %p520_p13 }
  0x38   : > { %404 = vmatmul.msk.bf16.vlgmr.msra.gmra.mxu1 %vm235_vm2, %v411_v19 }
  0x39   : > { %p526_p7 = pnand %p525_p5, %p521_p0 }
  0x9e   : > { %v205_v21 = vpop.permute.xlu0 %204 }
  0xa6   : > { %v210_v29 = vpop.permute.xlu0 %209 }
  0xb4   : > { %v258_v22 = vpop.f32.mrf.mxu0 }
  0xb5   : > { %v259_v23 = vadd.f32 %v258_v22, %v205_v21  ;;  %v272_v24 = vpop.f32.mrf.mxu1 }
  0xb6   : > { %v273_v25 = vadd.f32 %v272_v24, %v205_v21 }
  0xb7   : > { %v277_v26 = vmax.f32 %v259_v23, 0.0 }
  0xb8   : > { %v278_v27 = vmax.f32 %v273_v25, 0.0 }
  0xba   : > { %v281_v28 = vpack.c.bf16 %v278_v27, %v277_v26 }
  0xbc   : > { %283 = vst [vmem:[%s190_s26] sm:$0xff] %v281_v28  ;;  %v260_v30 = vpop.f32.mrf.mxu0 }
  0xbd   : > { %v261_v31 = vadd.f32 %v260_v30, %v210_v29  ;;  %v274_v32 = vpop.f32.mrf.mxu1 }
  0xbe   : > { %v275_v33 = vadd.f32 %v274_v32, %v210_v29 }
  0xbf   : > { %v279_v34 = vmax.f32 %v261_v31, 0.0 }
  0xc0   : > { %v280_v35 = vmax.f32 %v275_v33, 0.0 }
  0xc2   : > { %v282_v36 = vpack.c.bf16 %v280_v35, %v279_v34 }
  0xc4   : > { %284 = vst [vmem:[%s190_s26 + $0x8] sm:$0xff] %v282_v36 }
  0xc5   : > { %529 = shalt.err (!%p526_p7)
}
  0xc6   : > { %s575_s30 = smov 128   ;;  %s576_s9 = smov 256  }
  0xc7   : > { %s577_s11 = smov 8  }
  0xc8   : > { %419 = dma.vmem_to_hbm [thread:$0]  (%p648_p11), %s299_s28, 256, %s301_s29, %s286_s16, %s575_s30, %s576_s9, %s577_s11  }
  0xc9 PF: > { %s315_s17 = sand.u32 1, %s556_s12   ;;  %p426_p8 = pnand %p376_p9, %p652_p12 }
  0xca   : > { %s316_s19 = scalar_lea.sflag [#allocation4], %s315_s17 }
  0xcb   : > { %p427_p10 = pneg %p426_p8 }
  0xcd   : > { %551 = dma.done.wait (%p427_p10), %s316_s19, 256  }
  0xce   : > { %553 = vsyncadd (%p427_p10), %s316_s19, 4294967040  ;;  %p16_p1 = scmp.ge.s32.totalorder %s623_s18, 4   ;;  %s742_s12 = smov %s560_s13 }
  0xcf   : > { %s743_s13 = smov %s564_s14  ;;  %s744_s14 = smov %s635_s21 }
  0xd0   : > { %s745_s15 = smov %s623_s18  ;;  %18 = sbr.rel (!%p16_p1) target bundleno = 5 (0x5), region = 77 }
  0xd5   :  { %322 = vsyncpa [#allocation3], 1 }
  0xd6   :  { %324 = vsyncpa [#allocation3 + $0x1], 1 }
  0xd7   :  { %325 = vsyncpa [#allocation4], 1 }
  0xd8   :  { %327 = vsyncpa [#allocation4 + $0x1], 1 }

</bundles_post_ra>
